<compile_context>
chip_gen: v7x
topology: tpu7x:2x2x1
jax: 0.10.0
libtpu: 0.0.40
codegen_flags: <defaults>
</compile_context>

<pallas_src>
import functools

import jax
import jax.numpy as jnp
from jax import lax
from jax.experimental import pallas as pl
from jax.experimental.pallas import tpu as pltpu


# ----------------------------- small helpers --------------------------------


def _round_up(a, b):
    return (a + b - 1) // b * b


def _round_down(a, b):
    return a // b * b


def _vmem_capacity_bytes():
    try:
        info = pltpu.get_tpu_info()
        cap = getattr(info, "vmem_capacity_bytes", None)
        if cap:
            return int(cap)
    except Exception:
        pass
    return 64 * 1024 * 1024          # conservative fallback (v7x per-TC VMEM)


def _vmem_limit_bytes():
    # 128 MiB chips (v5e/v6e) -> ~96 MiB scoped limit, 64 MiB chips -> ~48 MiB.
    return min(_vmem_capacity_bytes() * 3 // 4, 100 * 1024 * 1024)


def _tile_c_for(c, max_cols):
    """Lane tile: full width if C <= 128, else a multiple of 128 that
    (a) never exceeds the array extent, (b) fits `max_cols`, and (c) leaves
    >= 2 C-tiles so a two-TensorCore chip (v7x) gets work on both cores."""
    if c <= 128:
        return c
    n_lane_blocks = _round_up(c, 128) // 128
    half = ((n_lane_blocks + 1) // 2) * 128
    floor_c = _round_down(c, 128)
    cap = max(128, _round_down(int(max_cols), 128))
    return max(128, min(cap, floor_c, half))


def _fused_tile_c(n, c, itemsize, vmem_limit):
    """Feature tile for the fused (full-batch-per-block) train kernel, or None
    if even a 128-lane column strip of the whole batch would not fit VMEM."""
    budget = vmem_limit * 7 // 10
    # Per feature column: double-buffered x + y tiles plus ~2 f32 working copies.
    per_col = n * (4 * itemsize + 2 * 4)
    max_cols = budget // max(per_col, 1)
    if max_cols < min(c, 128):
        return None
    return _tile_c_for(c, max_cols)


def _two_pass_tiles(n, c, itemsize, vmem_limit, tile_n_override=None):
    """(TILE_N, TILE_C) for the N-tiled stats / normalize kernels."""
    tile_c = _tile_c_for(c, 2048)
    if tile_n_override is not None:
        return int(tile_n_override), tile_c
    target = (12 if vmem_limit >= 80 * 1024 * 1024 else 6) * 1024 * 1024
    rows = max(1, target // (tile_c * itemsize))
    if n <= 8 or rows >= n:
        return n, tile_c                       # single, full-dim N tile
    return max(8, _round_down(min(rows, n), 8)), tile_c


# ----------------------------- kernels ---------------------------------------


def _sep_bn_fused_train_kernel(x_ref, p_ref, y_ref, stats_ref, *, eps, momentum, n):
    """Full batch per block; 1-D grid over feature tiles."""
    x = x_ref[...].astype(jnp.float32)           # (N, TILE_C)
    p = p_ref[...]                                # (4, TILE_C) f32: w, b, rm, rv
    w, b = p[0:1, :], p[1:2, :]
    rm, rv = p[2:3, :], p[3:4, :]

    inv_n = 1.0 / float(n)
    sum_x = jnp.sum(x, axis=0, keepdims=True)                 # single pass over x
    sum_x2 = jnp.sum(x * x, axis=0, keepdims=True)
    mean = sum_x * inv_n
    var_b = jnp.maximum(sum_x2 * inv_n - mean * mean, 0.0)    # biased variance

    inv_std = lax.rsqrt(var_b + eps)
    scale = w * inv_std                                        # fused affine
    shift = b - mean * scale
    y_ref[...] = (x * scale + shift).astype(y_ref.dtype)

    # TODO(synk): PyTorch's unbiased variance is NaN for N == 1; we clamp N-1 to 1.
    var_u = var_b * (float(n) / float(max(n - 1, 1)))
    stats_ref[0:1, :] = (1.0 - momentum) * rm + momentum * mean
    stats_ref[1:2, :] = (1.0 - momentum) * rv + momentum * var_u


def _sep_bn_partial_stats_kernel(x_ref, sums_ref, *, tile_n, n_total):
    """Accumulate per-feature sum and sum-of-squares over N tiles (N axis last,
    'arbitrary'; sums block is resident across it)."""
    n_idx = pl.program_id(1)

    @pl.when(n_idx == 0)
    def _():
        sums_ref[...] = jnp.zeros_like(sums_ref)

    x = x_ref[...].astype(jnp.float32)            # (TILE_N, TILE_C)
    if n_total % tile_n != 0:
        # Mask rows of the ragged last N block so they don't pollute the sums.
        row = lax.broadcasted_iota(jnp.int32, x.shape, 0) + n_idx * tile_n
        x = jnp.where(row < n_total, x, 0.0)
    sums_ref[0:1, :] = sums_ref[0:1, :] + jnp.sum(x, axis=0, keepdims=True)
    sums_ref[1:2, :] = sums_ref[1:2, :] + jnp.sum(x * x, axis=0, keepdims=True)


def _sep_bn_normalize_kernel(x_ref, p_ref, y_ref):
    """Elementwise y = x * scale + shift; 2-D grid over (C tiles, N tiles)."""
    x = x_ref[...].astype(jnp.float32)            # (TILE_N, TILE_C)
    p = p_ref[...]                                # (2, TILE_C) f32: scale, shift
    y_ref[...] = (x * p[0:1, :] + p[1:2, :]).astype(y_ref.dtype)


# ----------------------------- pallas_call helpers ---------------------------


def _partial_stats(x, tile_n, tile_c, vmem_limit):
    n, c = x.shape
    kernel = functools.partial(_sep_bn_partial_stats_kernel,
                               tile_n=tile_n, n_total=n)
    return pl.pallas_call(
        kernel,
        out_shape=jax.ShapeDtypeStruct((2, c), jnp.float32),
        grid=(pl.cdiv(c, tile_c), pl.cdiv(n, tile_n)),
        in_specs=[pl.BlockSpec((tile_n, tile_c), lambda j, k: (k, j))],
        out_specs=pl.BlockSpec((2, tile_c), lambda j, k: (0, j)),
        compiler_params=pltpu.CompilerParams(
            dimension_semantics=("parallel", "arbitrary"),
            vmem_limit_bytes=vmem_limit),
    )(x)


def _normalize(x, scale, shift, tile_n, tile_c, vmem_limit):
    n, c = x.shape
    params = jnp.stack([scale, shift], axis=0)    # (2, C) f32
    return pl.pallas_call(
        _sep_bn_normalize_kernel,
        out_shape=jax.ShapeDtypeStruct((n, c), x.dtype),
        grid=(pl.cdiv(c, tile_c), pl.cdiv(n, tile_n)),
        in_specs=[pl.BlockSpec((tile_n, tile_c), lambda j, k: (k, j)),
                  pl.BlockSpec((2, tile_c), lambda j, k: (0, j))],
        out_specs=pl.BlockSpec((tile_n, tile_c), lambda j, k: (k, j)),
        compiler_params=pltpu.CompilerParams(
            dimension_semantics=("parallel", "parallel"),
            vmem_limit_bytes=vmem_limit),
    )(x, params)


# ----------------------------- public wrapper --------------------------------


@functools.partial(
    jax.jit,
    static_argnames=("eps", "momentum", "training", "_force_two_pass", "_tile_n"))
def separated_batch_norm_1d(x, timestep, weight, bias,
                            running_means, running_vars, *,
                            eps=1e-5, momentum=0.1, training=True,
                            _force_two_pass=False, _tile_n=None):
    """Forward of SeparatedBatchNorm1d.

    Args:
      x:             (N, C) input.
      timestep:      scalar timestep index (traced; clamped to max_length-1,
                     like the PyTorch module's `if timestep >= max_length`).
      weight, bias:  (C,) affine params.
      running_means: (max_length, C) per-timestep running means.
      running_vars:  (max_length, C) per-timestep running vars.

    Returns:
      y:       (N, C) normalized output.
      new_rm:  (C,) updated running mean for this timestep.
      new_rv:  (C,) updated running var for this timestep.
    """
    N, C = x.shape
    max_length, c2 = running_means.shape
    if c2 != C:
        raise ValueError('got {}-feature tensor, expected {}'.format(C, c2))

    # Traced clamp + gather of the per-timestep buffers (no recompile per step).
    t = jnp.clip(jnp.asarray(timestep, jnp.int32), 0, max_length - 1)
    rm_t = lax.dynamic_slice_in_dim(running_means, t, 1, axis=0)[0].astype(jnp.float32)
    rv_t = lax.dynamic_slice_in_dim(running_vars, t, 1, axis=0)[0].astype(jnp.float32)
    w32 = weight.astype(jnp.float32)
    b32 = bias.astype(jnp.float32)

    itemsize = jnp.dtype(x.dtype).itemsize
    vmem_limit = _vmem_limit_bytes()

    if training:
        tile_c = None if _force_two_pass else _fused_tile_c(N, C, itemsize, vmem_limit)
        if tile_c is not None:
            # Fused single-pass kernel: whole batch per block, 1-D grid over C.
            params = jnp.stack([w32, b32, rm_t, rv_t], axis=0)        # (4, C)
            kernel = functools.partial(
                _sep_bn_fused_train_kernel,
                eps=float(eps), momentum=float(momentum), n=N)
            y, stats = pl.pallas_call(
                kernel,
                out_shape=(jax.ShapeDtypeStruct((N, C), x.dtype),
                           jax.ShapeDtypeStruct((2, C), jnp.float32)),
                grid=(pl.cdiv(C, tile_c),),
                in_specs=[pl.BlockSpec((N, tile_c), lambda j: (0, j)),
                          pl.BlockSpec((4, tile_c), lambda j: (0, j))],
                out_specs=(pl.BlockSpec((N, tile_c), lambda j: (0, j)),
                           pl.BlockSpec((2, tile_c), lambda j: (0, j))),
                compiler_params=pltpu.CompilerParams(
                    dimension_semantics=("parallel",),
                    vmem_limit_bytes=vmem_limit),
            )(x, params)
            return (y,
                    stats[0].astype(running_means.dtype),
                    stats[1].astype(running_vars.dtype))

        # Two-pass path (large batch): N-tiled sum/sumsq reduction, tiny (C,)
        # finalize in the wrapper, then an (N, C)-tiled elementwise normalize.
        tile_n, tile_c = _two_pass_tiles(N, C, itemsize, vmem_limit, _tile_n)
        sums = _partial_stats(x, tile_n, tile_c, vmem_limit)          # (2, C) f32
        mean = sums[0] / N
        var_b = jnp.maximum(sums[1] / N - mean * mean, 0.0)           # biased
        inv_std = lax.rsqrt(var_b + eps)
        scale = w32 * inv_std
        shift = b32 - mean * scale
        # TODO(synk): PyTorch's unbiased variance is NaN for N == 1; we clamp N-1 to 1.
        var_u = var_b * (float(N) / float(max(N - 1, 1)))
        new_rm = ((1.0 - momentum) * rm_t + momentum * mean).astype(running_means.dtype)
        new_rv = ((1.0 - momentum) * rv_t + momentum * var_u).astype(running_vars.dtype)
        y = _normalize(x, scale, shift, tile_n, tile_c, vmem_limit)
        return y, new_rm, new_rv

    # Eval: scale/shift from the selected running stats (tiny (C,) wrapper
    # math), then the elementwise normalize kernel.
    inv_std = lax.rsqrt(rv_t + eps)
    scale = w32 * inv_std
    shift = b32 - rm_t * scale
    tile_n, tile_c = _two_pass_tiles(N, C, itemsize, vmem_limit, _tile_n)
    y = _normalize(x, scale, shift, tile_n, tile_c, vmem_limit)
    return y, rm_t.astype(running_means.dtype), rv_t.astype(running_vars.dtype)


def update_running_buffers(running_means, running_vars, timestep, new_rm, new_rv):
    """Scatter the per-timestep update back into the (max_length, C) buffers.

    Call this inside the caller's jitted RNN step with `donate_argnums` on the
    running buffers so the update happens in place instead of copying the whole
    buffer in HBM every timestep.
    """
    t = jnp.clip(jnp.asarray(timestep, jnp.int32), 0, running_means.shape[0] - 1)
    rm = lax.dynamic_update_slice_in_dim(
        running_means, new_rm[None, :].astype(running_means.dtype), t, axis=0)
    rv = lax.dynamic_update_slice_in_dim(
        running_vars, new_rv[None, :].astype(running_vars.dtype), t, axis=0)
    return rm, rv


# ----------------------------- reference / demo ------------------------------


def _reference_train(x, t, weight, bias, rms, rvs, eps=1e-5, momentum=0.1):
    t = min(int(t), rms.shape[0] - 1)
    mean = jnp.mean(x, axis=0)
    var_b = jnp.mean((x - mean) ** 2, axis=0)
    y = (x - mean) / jnp.sqrt(var_b + eps) * weight + bias
    n = x.shape[0]
    var_u = var_b * n / max(n - 1, 1)
    new_rm = (1 - momentum) * rms[t] + momentum * mean
    new_rv = (1 - momentum) * rvs[t] + momentum * var_u
    return y, new_rm, new_rv


def _reference_eval(x, t, weight, bias, rms, rvs, eps=1e-5):
    t = min(int(t), rms.shape[0] - 1)
    y = (x - rms[t]) / jnp.sqrt(rvs[t] + eps) * weight + bias
    return y, rms[t], rvs[t]


if __name__ == "__main__":
    ok = True

    # --- small case (C < 128 -> full-width lane block, fused train path) -----
    batch, num_features, max_length = 8, 32, 8
    k_x, k_w, k_rv = jax.random.split(jax.random.PRNGKey(0), 3)
    x = jax.random.normal(k_x, (batch, num_features), dtype=jnp.float32)
    weight = jax.random.uniform(k_w, (num_features,), dtype=jnp.float32)
    bias = jnp.zeros((num_features,), dtype=jnp.float32)
    running_means = jnp.zeros((max_length, num_features), dtype=jnp.float32)
    running_vars = jnp.ones((max_length, num_features), dtype=jnp.float32) \
        + 0.5 * jax.random.uniform(k_rv, (max_length, num_features), dtype=jnp.float32)

    # Training mode, including a timestep beyond max_length (clamp path).
    for ts in (3, 11):
        y, nrm, nrv = separated_batch_norm_1d(
            x, ts, weight, bias, running_means, running_vars,
            eps=1e-5, momentum=0.1, training=True)
        jax.block_until_ready((y, nrm, nrv))
        y_r, rm_r, rv_r = _reference_train(x, ts, weight, bias,
                                           running_means, running_vars)
        ok &= bool(jnp.allclose(y, y_r, atol=1e-4, rtol=1e-5))
        ok &= bool(jnp.allclose(nrm, rm_r, atol=1e-5, rtol=1e-5))
        ok &= bool(jnp.allclose(nrv, rv_r, atol=1e-5, rtol=1e-5))

    # Eval mode (elementwise normalize kernel).
    y, nrm, nrv = separated_batch_norm_1d(
        x, 2, weight, bias, running_means, running_vars,
        eps=1e-5, momentum=0.1, training=False)
    jax.block_until_ready((y, nrm, nrv))
    y_r, rm_r, rv_r = _reference_eval(x, 2, weight, bias,
                                      running_means, running_vars)
    ok &= bool(jnp.allclose(y, y_r, atol=1e-4, rtol=1e-5))
    ok &= bool(jnp.allclose(nrm, rm_r, atol=1e-6, rtol=1e-6))
    ok &= bool(jnp.allclose(nrv, rv_r, atol=1e-6, rtol=1e-6))

    # Write-back helper (functional replacement for PyTorch's in-place buffers).
    rm_buf, rv_buf = update_running_buffers(running_means, running_vars, 3, nrm, nrv)
    jax.block_until_ready((rm_buf, rv_buf))
    ok &= bool(jnp.allclose(rm_buf[3], nrm)) and bool(jnp.allclose(rv_buf[3], nrv))

    # --- ragged feature dim (C = 200, not a multiple of 128): no padding,
    #     edge lane block masked on store --------------------------------------
    n2, c2, l2 = 16, 200, 4
    k2x, k2w, k2b, k2v = jax.random.split(jax.random.PRNGKey(1), 4)
    x2 = jax.random.normal(k2x, (n2, c2), dtype=jnp.float32)
    w2 = jax.random.uniform(k2w, (c2,), dtype=jnp.float32)
    b2 = 0.1 * jax.random.normal(k2b, (c2,), dtype=jnp.float32)
    rms2 = 0.05 * jnp.ones((l2, c2), dtype=jnp.float32)
    rvs2 = jnp.ones((l2, c2), dtype=jnp.float32) \
        + 0.25 * jax.random.uniform(k2v, (l2, c2), dtype=jnp.float32)

    y2, nrm2, nrv2 = separated_batch_norm_1d(
        x2, 1, w2, b2, rms2, rvs2, training=True)
    jax.block_until_ready((y2, nrm2, nrv2))
    y2r, rm2r, rv2r = _reference_train(x2, 1, w2, b2, rms2, rvs2)
    ok &= bool(jnp.allclose(y2, y2r, atol=1e-4, rtol=1e-5))
    ok &= bool(jnp.allclose(nrm2, rm2r, atol=1e-5, rtol=1e-5))
    ok &= bool(jnp.allclose(nrv2, rv2r, atol=1e-5, rtol=1e-5))

    y2e, _, _ = separated_batch_norm_1d(x2, 1, w2, b2, rms2, rvs2, training=False)
    jax.block_until_ready(y2e)
    y2er, _, _ = _reference_eval(x2, 1, w2, b2, rms2, rvs2)
    ok &= bool(jnp.allclose(y2e, y2er, atol=1e-4, rtol=1e-5))

    # --- force the large-batch two-pass path at a small shape (N = 20, tile_n=8,
    #     ragged last N block exercises the in-kernel row mask) ----------------
    n3 = 20
    x3 = jax.random.normal(jax.random.PRNGKey(2), (n3, num_features),
                           dtype=jnp.float32)
    y3, nrm3, nrv3 = separated_batch_norm_1d(
        x3, 5, weight, bias, running_means, running_vars,
        training=True, _force_two_pass=True, _tile_n=8)
    jax.block_until_ready((y3, nrm3, nrv3))
    y3r, rm3r, rv3r = _reference_train(x3, 5, weight, bias,
                                       running_means, running_vars)
    ok &= bool(jnp.allclose(y3, y3r, atol=1e-4, rtol=1e-5))
    ok &= bool(jnp.allclose(nrm3, rm3r, atol=1e-5, rtol=1e-5))
    ok &= bool(jnp.allclose(nrv3, rv3r, atol=1e-5, rtol=1e-5))

    assert ok
    print("KERNEL_OK")
</pallas_src>

<mosaic_0001>
module attributes {stable_mosaic.version = 11 : i64} {
  func.func @_sep_bn_fused_train_kernel(%arg0: i32, %arg1: memref<8x32xf32, #tpu.memory_space<vmem>>, %arg2: memref<4x32xf32, #tpu.memory_space<vmem>>, %arg3: memref<8x32xf32, #tpu.memory_space<vmem>>, %arg4: memref<2x32xf32, #tpu.memory_space<vmem>>) attributes {dimension_semantics = [#tpu.dimension_semantics<parallel>], iteration_bounds = array<i64: 1>, scalar_prefetch = 0 : i64, scratch_operands = 0 : i64, tpu.core_type = #tpu.core_type<tc>, window_params = [{transform_indices = @transform_0, window_bounds = array<i64: 8, 32>}, {transform_indices = @transform_1, window_bounds = array<i64: 4, 32>}, {transform_indices = @transform_2, window_bounds = array<i64: 8, 32>}, {transform_indices = @transform_3, window_bounds = array<i64: 2, 32>}]} {
    %c0 = arith.constant 0 : index
    %c0_0 = arith.constant 0 : index
    %0 = vector.load %arg1[%c0, %c0_0] : memref<8x32xf32, #tpu.memory_space<vmem>>, vector<8x32xf32>
    %c0_1 = arith.constant 0 : index
    %c0_2 = arith.constant 0 : index
    %1 = vector.load %arg2[%c0_1, %c0_2] : memref<4x32xf32, #tpu.memory_space<vmem>>, vector<4x32xf32>
    %2 = vector.extract_strided_slice %1 {offsets = [0, 0], sizes = [1, 32], strides = [1, 1]} : vector<4x32xf32> to vector<1x32xf32>
    %3 = vector.extract_strided_slice %1 {offsets = [1, 0], sizes = [1, 32], strides = [1, 1]} : vector<4x32xf32> to vector<1x32xf32>
    %4 = vector.extract_strided_slice %1 {offsets = [2, 0], sizes = [1, 32], strides = [1, 1]} : vector<4x32xf32> to vector<1x32xf32>
    %5 = vector.extract_strided_slice %1 {offsets = [3, 0], sizes = [1, 32], strides = [1, 1]} : vector<4x32xf32> to vector<1x32xf32>
    %cst = arith.constant dense<0.000000e+00> : vector<32xf32>
    %6 = vector.multi_reduction <add>, %0, %cst [0] : vector<8x32xf32> to vector<32xf32>
    %7 = vector.shape_cast %6 : vector<32xf32> to vector<1x32xf32>
    %8 = arith.mulf %0, %0 : vector<8x32xf32>
    %cst_3 = arith.constant dense<0.000000e+00> : vector<32xf32>
    %9 = vector.multi_reduction <add>, %8, %cst_3 [0] : vector<8x32xf32> to vector<32xf32>
    %10 = vector.shape_cast %9 : vector<32xf32> to vector<1x32xf32>
    %cst_4 = arith.constant 1.250000e-01 : f32
    %11 = vector.broadcast %cst_4 : f32 to vector<1x32xf32>
    %12 = arith.mulf %7, %11 : vector<1x32xf32>
    %cst_5 = arith.constant 1.250000e-01 : f32
    %13 = vector.broadcast %cst_5 : f32 to vector<1x32xf32>
    %14 = arith.mulf %10, %13 : vector<1x32xf32>
    %15 = arith.mulf %12, %12 : vector<1x32xf32>
    %16 = arith.subf %14, %15 : vector<1x32xf32>
    %cst_6 = arith.constant 0.000000e+00 : f32
    %17 = vector.broadcast %cst_6 : f32 to vector<1x32xf32>
    %18 = arith.maximumf %16, %17 : vector<1x32xf32>
    %cst_7 = arith.constant 9.99999974E-6 : f32
    %19 = vector.broadcast %cst_7 : f32 to vector<1x32xf32>
    %20 = arith.addf %18, %19 : vector<1x32xf32>
    %21 = math.rsqrt %20 : vector<1x32xf32>
    %22 = arith.mulf %2, %21 : vector<1x32xf32>
    %23 = arith.mulf %12, %22 : vector<1x32xf32>
    %24 = arith.subf %3, %23 : vector<1x32xf32>
    %25 = vector.broadcast %22 : vector<1x32xf32> to vector<8x32xf32>
    %26 = arith.mulf %0, %25 : vector<8x32xf32>
    %27 = vector.broadcast %24 : vector<1x32xf32> to vector<8x32xf32>
    %28 = arith.addf %26, %27 : vector<8x32xf32>
    %c0_8 = arith.constant 0 : index
    %c0_9 = arith.constant 0 : index
    %29 = vector.load %arg3[%c0_8, %c0_9] : memref<8x32xf32, #tpu.memory_space<vmem>>, vector<8x32xf32>
    tpu.vector_store %arg3[%c0_8, %c0_9], %28 {strides = array<i32>} : memref<8x32xf32, #tpu.memory_space<vmem>>, vector<8x32xf32>,
    %cst_10 = arith.constant 1.14285719 : f32
    %30 = vector.broadcast %cst_10 : f32 to vector<1x32xf32>
    %31 = arith.mulf %18, %30 : vector<1x32xf32>
    %cst_11 = arith.constant 0.899999976 : f32
    %32 = vector.broadcast %cst_11 : f32 to vector<1x32xf32>
    %33 = arith.mulf %32, %4 : vector<1x32xf32>
    %cst_12 = arith.constant 1.000000e-01 : f32
    %34 = vector.broadcast %cst_12 : f32 to vector<1x32xf32>
    %35 = arith.mulf %34, %12 : vector<1x32xf32>
    %36 = arith.addf %33, %35 : vector<1x32xf32>
    %c0_13 = arith.constant 0 : index
    %c0_14 = arith.constant 0 : index
    %37 = vector.load %arg4[%c0_13, %c0_14] : memref<2x32xf32, #tpu.memory_space<vmem>>, vector<1x32xf32>
    tpu.vector_store %arg4[%c0_13, %c0_14], %36 {strides = array<i32>} : memref<2x32xf32, #tpu.memory_space<vmem>>, vector<1x32xf32>,
    %cst_15 = arith.constant 0.899999976 : f32
    %38 = vector.broadcast %cst_15 : f32 to vector<1x32xf32>
    %39 = arith.mulf %38, %5 : vector<1x32xf32>
    %cst_16 = arith.constant 1.000000e-01 : f32
    %40 = vector.broadcast %cst_16 : f32 to vector<1x32xf32>
    %41 = arith.mulf %40, %31 : vector<1x32xf32>
    %42 = arith.addf %39, %41 : vector<1x32xf32>
    %c1 = arith.constant 1 : index
    %c0_17 = arith.constant 0 : index
    %43 = vector.load %arg4[%c1, %c0_17] : memref<2x32xf32, #tpu.memory_space<vmem>>, vector<1x32xf32>
    tpu.vector_store %arg4[%c1, %c0_17], %42 {strides = array<i32>} : memref<2x32xf32, #tpu.memory_space<vmem>>, vector<1x32xf32>,
    return
  }
  func.func @transform_0(%arg0: i32) -> (i32, i32) {
    %c0_i32 = arith.constant 0 : i32
    %c0_i32_0 = arith.constant 0 : i32
    return %c0_i32, %arg0 : i32, i32
  }
  func.func @transform_1(%arg0: i32) -> (i32, i32) {
    %c0_i32 = arith.constant 0 : i32
    %c0_i32_0 = arith.constant 0 : i32
    return %c0_i32, %arg0 : i32, i32
  }
  func.func @transform_2(%arg0: i32) -> (i32, i32) {
    %c0_i32 = arith.constant 0 : i32
    %c0_i32_0 = arith.constant 0 : i32
    return %c0_i32, %arg0 : i32, i32
  }
  func.func @transform_3(%arg0: i32) -> (i32, i32) {
    %c0_i32 = arith.constant 0 : i32
    %c0_i32_0 = arith.constant 0 : i32
    return %c0_i32, %arg0 : i32, i32
  }
}

</mosaic_0001>

<bundles_post_ra>
// kernel: separated_batch_norm_1d.1
= control target key start
LH: loop header
LB: loop body
LE: loop exit
PB: predicated region body
PF: predicated region fallthrough
CT: control target
= control target key end

     0   :  { %vm16_vm0 = vcmask 261120   ;;  %s159_s0 = inlined_call_operand.vmem [shape: f32[8,32], index: 0, kind: input, shape index: {}]   ;;  %s160_s1 = inlined_call_operand.vmem [shape: f32[4,32], index: 1, kind: input, shape index: {}]   ;;  %s161_s2 = inlined_call_operand.hbm [shape: f32[8,32], index: 2, kind: output, shape index: {0}]   ;;  %s162_s3 = inlined_call_operand.vmem [shape: f32[2,32], index: 3, kind: output, shape index: {1}]  }
   0x1   :  { %v14_v0 = vld [vmem:[%s159_s0] sm:$0xff] }
   0x2   :  { %v17_v1 = vsel %vm16_vm0, %v14_v0, 0.0  ;;  %v24_v2 = vmul.f32 %v14_v0, %v14_v0 }
   0x3   :  { %9 = vsyncpa [#allocation3], 0  ;;  %v18_v3 = vrot.slane %v17_v1, 4  ;;  %v15_v15 = vld [vmem:[%s160_s1] sm:$0xf]  ;;  %vm60_vm1 = vcmask 256002   ;;  %v45_v28 = vlaneseq }
   0x4   :  { %v25_v4 = vsel %vm16_vm0, %v24_v2, 0.0  ;;  %v57_v18 = vmul.f32 0.9, %v15_v15  ;;  %vm64_vm2 = vcmask 257027   ;;  %s111_s18 = smov [#allocation2]  }
   0x5   :  { %v19_v5 = vadd.f32 %v18_v3, %v17_v1  ;;  %v26_v6 = vrot.slane %v25_v4, 4  ;;  %v46_v30 = vshrl.u32 %v45_v28, 7  ;;  %s72_s19 = sshll.u32 %s111_s18, 4  ;;  %s73_s19 = int_to_ptr.vmem [resolvable:$true] %s72_s19 }
   0x6   :  { %s87_s20 = scalar_lea.vmem %s73_s19, 128  ;;  %p92_p1 = scmp.lt.s32.totalorder %s73_s19, %s73_s19 }
   0x7   :  { %v20_v7 = vrot.slane %v19_v5, 2  ;;  %v27_v8 = vadd.f32 %v26_v6, %v25_v4  ;;  %v47_v31 = vsub.s32 0, %v46_v30  ;;  %v52_v37 = vsub.s32 1, %v46_v30  ;;  %p88_p0 = scmp.ne.s32.totalorder %s73_s19, %s87_s20  ;;  %p93_p2 = scmp.lt.s32.totalorder %s87_s20, %s87_s20 }
   0x9   :  { %v21_v9 = vadd.f32 %v20_v7, %v19_v5  ;;  %v28_v10 = vrot.slane %v27_v8, 2  ;;  %p94_p3 = por %p93_p2, %p92_p1 }
   0xb   :  { %v22_v11 = vrot.slane %v21_v9, 1  ;;  %v29_v12 = vadd.f32 %v28_v10, %v27_v8  ;;  %p95_p4 = pnand %p94_p3, %p88_p0 }
   0xd   :  { %v23_v13 = vadd.f32 %v22_v11, %v21_v9  ;;  %v30_v14 = vrot.slane %v29_v12, 1 }
   0xf   :  { %v31_v16 = vadd.f32 %v30_v14, %v29_v12  ;;  %v32_v17 = vmul.f32 0.125, %v23_v13 }
  0x11   :  { %v33_v19 = vmul.f32 0.125, %v31_v16  ;;  %v34_v20 = vmul.f32 %v32_v17, %v32_v17  ;;  %v58_v21 = vmul.f32 0.1, %v32_v17 }
  0x13   :  { %v35_v22 = vsub.f32 %v33_v19, %v34_v20  ;;  %v59_v23 = vadd.f32 %v58_v21, %v57_v18 }
  0x15   :  { %v36_v24 = vmax.f32 %v35_v22, 0.0  ;;  %61 = vst.msk [vmem:[%s162_s3 - $0x2] sm:$0x4] %vm60_vm1, %v59_v23 }
  0x17   :  { %v37_v25 = vadd.f32 1e-05, %v36_v24  ;;  %v56_v26 = vmul.f32 1.1428572, %v36_v24 }
  0x19   :  { %85 = vrsqrt.f32 %v37_v25  ;;  %v62_v27 = vmul.f32 0.1, %v56_v26 }
  0x1b   :  { %v63_v29 = vadd.f32 %v62_v27, %v57_v18 }
  0x1d   :  { %65 = vst.msk [vmem:[%s162_s3 - $0x2] sm:$0x8] %vm64_vm2, %v63_v29 }
  0x23   :  { %v86_v32 = vpop.eup %85 }
  0x24   :  { %v39_v33 = vmul.f32 %v86_v32, %v15_v15 }
  0x26   :  { %v40_v34 = vmul.f32 %v39_v33, %v32_v17  ;;  %v48_v35 = vrot.slane %v39_v33, %v47_v31 }
  0x28   :  { %v42_v36 = vrot.slane %v40_v34, 7  ;;  %v49_v39 = vmul.f32 %v48_v35, %v14_v0 }
  0x2a   :  { %v44_v38 = vsub.f32 %v15_v15, %v42_v36 }
  0x2c   :  { %v53_v40 = vrot.slane %v44_v38, %v52_v37 }
  0x2e   :  { %v54_v41 = vadd.f32 %v53_v40, %v49_v39 }
  0x30   :  { %55 = vst.msk [vmem:[#allocation2] sm:$0xff] %vm16_vm0, %v54_v41 }
  0x31   :  { %98 = shalt.err (!%p95_p4)
}
  0x32   :  { %s99_s22 = scalar_lea.hbm %s161_s2, 128 }
  0x33   :  { %p100_p5 = scmp.ne.s32.totalorder %s161_s2, %s99_s22  ;;  %p103_p6 = scmp.lt.u32.totalorder %s99_s22, %s161_s2 }
  0x35   :  { %p105_p7 = pnand %p103_p6, %p100_p5 }
  0x37   :  { %108 = shalt.err (!%p105_p7)
}
  0x38   :  { %75 = dma.vmem_to_hbm [thread:$0]  %s73_s19, 128, %s161_s2, [#allocation3]  }
  0x39   :  { %109 = dma.done.wait [#allocation3], 128  }
  0x3a   :  { %110 = vsyncadd [#allocation3], 4294967168 }
  0x3b   :  { %83 = vsyncpa [#allocation3], 1 }

</bundles_post_ra>
